<compile_context>
chip_gen: v7x
topology: tpu7x:2x2x1
jax: 0.10.0
libtpu: 0.0.40
codegen_flags: <defaults>
</compile_context>

<pallas_src>
import functools

import jax
import jax.numpy as jnp
from jax.experimental import pallas as pl
from jax.experimental.pallas import tpu as pltpu


def _ce_label_smooth_kernel(x_ref, t_ref, o_ref, *, epsilon, num_classes,
                            batch, block_b):
    """One (TB, C) row tile -> one scalar partial of the smoothed NLL sum."""
    i = pl.program_id(0)

    # Load the row tile in its native dtype, upcast once for the softmax math.
    x = x_ref[...].astype(jnp.float32)                      # (TB, C)
    tb, c = x.shape

    # Numerically stable logsumexp; exp(x - m) is the only (TB, C) temporary.
    m = jnp.max(x, axis=1, keepdims=True)                   # (TB, 1)
    lse = jnp.log(jnp.sum(jnp.exp(x - m), axis=1, keepdims=True))   # (TB, 1)
    mlse = m + lse                                           # log(sum(exp(x)))

    # Gather x[row, target[row]] via an iota compare (no one-hot materialized).
    col = jax.lax.broadcasted_iota(jnp.int32, (tb, c), 1)
    tgt = t_ref[...]                                         # (TB, 1) int32
    x_tgt = jnp.sum(jnp.where(col == tgt, x, 0.0), axis=1, keepdims=True)

    row_sum_x = jnp.sum(x, axis=1, keepdims=True)            # (TB, 1)

    # target_lp  = log_probs[row, tgt]          = x[tgt] - mlse
    # row_sum_lp = sum_j log_probs[row, j]      = sum(x) - C * mlse
    target_lp = x_tgt - mlse
    row_sum_lp = row_sum_x - c * mlse

    contrib = ((1.0 - epsilon) * target_lp
               + (epsilon / num_classes) * row_sum_lp)       # (TB, 1)

    # Mask rows of a (possibly) padded last tile with a select: padded data is
    # undefined, a multiply-by-mask would propagate NaN/Inf.
    row = jax.lax.broadcasted_iota(jnp.int32, (tb, 1), 0)
    valid = (i * block_b + row) < batch
    o_ref[0, 0] = -jnp.sum(jnp.where(valid, contrib, 0.0))


def _round_up(x, m):
    return (x + m - 1) // m * m


def _vmem_capacity_bytes():
    """Physical VMEM of the current chip; conservative (v7x) fallback."""
    try:
        return int(pltpu.get_tpu_info().vmem_capacity_bytes)
    except Exception:
        return 64 * 1024 * 1024


def _per_row_vmem_bytes(c, itemsize):
    # Per row of the tile:
    #   2x double-buffered logits rows (native dtype)
    # + 2x double-buffered targets rows (int32, lane-padded to 128 lanes)
    # + ~3x compiler-materialized f32 intermediate rows (exp / select / iota).
    return 2 * c * itemsize + 2 * 128 * 4 + 3 * c * 4


def _pick_block_b(b, c, itemsize, sublane, vmem_cap):
    budget = vmem_cap // 2                    # leave half for compiler scratch
    rows = budget // _per_row_vmem_bytes(c, itemsize)
    rows = (rows // sublane) * sublane
    rows = min(rows, 4096)                    # diminishing returns past ~4 MiB
    rows = min(rows, _round_up(b, sublane))
    return max(rows, sublane)


def cross_entropy_label_smooth(inputs, targets, *, num_classes, epsilon,
                               block_b=None):
    """inputs: (B, num_classes) float logits; targets: (B,) integer labels."""
    b, c = inputs.shape
    assert c == num_classes

    itemsize = jnp.dtype(inputs.dtype).itemsize
    sublane = max(8, 32 // max(1, itemsize))   # 8 f32 / 16 bf16 / 32 int8-fp8
    vmem_cap = _vmem_capacity_bytes()

    if block_b is None:
        block_b = _pick_block_b(b, c, itemsize, sublane, vmem_cap)
        # Prefer >= 2 (even-count) grid steps so the "parallel" batch axis can
        # shard across both TensorCores on v7x (each has its own HBM path).
        grid = pl.cdiv(b, block_b)
        if b > sublane:
            target_steps = max(2, grid)
            if target_steps % 2:
                target_steps += 1
            cand = max(sublane,
                       _round_up(pl.cdiv(b, target_steps), sublane))
            if cand <= block_b:               # never exceed the VMEM budget
                block_b = cand
    grid = pl.cdiv(b, block_b)

    targets_2d = targets.reshape(b, 1).astype(jnp.int32)

    # Generation-aware scoped-VMEM request: what this tiling actually needs
    # (+ slack), clamped below physical VMEM (v7x 64 MiB, v5e/v6e 128 MiB).
    vmem_needed = block_b * _per_row_vmem_bytes(c, itemsize) + (2 << 20)
    vmem_limit = int(min(max(vmem_needed, 16 * 1024 * 1024), 0.9 * vmem_cap))

    kernel = functools.partial(
        _ce_label_smooth_kernel,
        epsilon=float(epsilon),
        num_classes=float(num_classes),
        batch=b,
        block_b=block_b,
    )

    partials = pl.pallas_call(
        kernel,
        out_shape=jax.ShapeDtypeStruct((grid, 1), jnp.float32),
        grid=(grid,),
        in_specs=[
            pl.BlockSpec((block_b, c), lambda i: (i, 0)),
            pl.BlockSpec((block_b, 1), lambda i: (i, 0)),
        ],
        out_specs=pl.BlockSpec((1, 1), lambda i: (i, 0),
                               memory_space=pltpu.SMEM),
        compiler_params=pltpu.CompilerParams(
            dimension_semantics=("parallel",),
            vmem_limit_bytes=vmem_limit,
        ),
    )(inputs, targets_2d)

    # Tiny final reduction + division by the *full* batch size.
    # Matches `(-smoothed_targets * log_probs).mean(0).sum()`.
    return jnp.sum(partials) / b


def _reference(inputs, targets, num_classes, epsilon):
    log_probs = jax.nn.log_softmax(inputs.astype(jnp.float32), axis=1)
    onehot = jax.nn.one_hot(targets, num_classes, dtype=jnp.float32)
    smoothed = (1.0 - epsilon) * onehot + epsilon / num_classes
    return (-smoothed * log_probs).mean(0).sum()


if __name__ == "__main__":
    epsilon = 0.1
    key = jax.random.PRNGKey(0)

    # Case 1: small classifier-like shape, single grid step (B == sublane).
    b1, c1 = 8, 32
    k1, k2, key = jax.random.split(key, 3)
    logits1 = jax.random.normal(k1, (b1, c1), dtype=jnp.float32)
    labels1 = jax.random.randint(k2, (b1,), 0, c1, dtype=jnp.int32)
    loss1 = cross_entropy_label_smooth(
        logits1, labels1, num_classes=c1, epsilon=epsilon)
    jax.block_until_ready(loss1)
    ref1 = _reference(logits1, labels1, c1, epsilon)
    assert jnp.allclose(loss1, ref1, atol=1e-5, rtol=1e-5), (loss1, ref1)

    # Case 2: forced multi-step batch grid (exercises the tiled/parallel path).
    b2, c2 = 128, 256
    k3, k4, key = jax.random.split(key, 3)
    logits2 = jax.random.normal(k3, (b2, c2), dtype=jnp.float32)
    labels2 = jax.random.randint(k4, (b2,), 0, c2, dtype=jnp.int32)
    loss2 = cross_entropy_label_smooth(
        logits2, labels2, num_classes=c2, epsilon=epsilon, block_b=32)
    jax.block_until_ready(loss2)
    ref2 = _reference(logits2, labels2, c2, epsilon)
    assert jnp.allclose(loss2, ref2, atol=1e-5, rtol=1e-5), (loss2, ref2)

    # Case 3: bf16 logits, auto tile sizing (exercises native-dtype load,
    # 16-row sublane rounding, and the >=2-step grid adjustment).
    b3, c3 = 32, 64
    k5, k6 = jax.random.split(key)
    logits3 = jax.random.normal(k5, (b3, c3), dtype=jnp.float32).astype(jnp.bfloat16)
    labels3 = jax.random.randint(k6, (b3,), 0, c3, dtype=jnp.int32)
    loss3 = cross_entropy_label_smooth(
        logits3, labels3, num_classes=c3, epsilon=epsilon)
    jax.block_until_ready(loss3)
    ref3 = _reference(logits3, labels3, c3, epsilon)
    assert jnp.allclose(loss3, ref3, atol=1e-4, rtol=1e-4), (loss3, ref3)

    print("KERNEL_OK")
</pallas_src>

<mosaic_0001>
module attributes {stable_mosaic.version = 11 : i64} {
  func.func @_ce_label_smooth_kernel(%arg0: i32, %arg1: memref<8x32xf32, #tpu.memory_space<vmem>>, %arg2: memref<8x1xi32, #tpu.memory_space<vmem>>, %arg3: memref<1x1xf32, #tpu.memory_space<smem>>) attributes {dimension_semantics = [#tpu.dimension_semantics<parallel>], iteration_bounds = array<i64: 1>, scalar_prefetch = 0 : i64, scratch_operands = 0 : i64, tpu.core_type = #tpu.core_type<tc>, window_params = [{transform_indices = @transform_0, window_bounds = array<i64: 8, 32>}, {transform_indices = @transform_1, window_bounds = array<i64: 8, 1>}, {transform_indices = @transform_2, window_bounds = array<i64: 1, 1>}]} {
    %c0 = arith.constant 0 : index
    %c0_0 = arith.constant 0 : index
    %0 = vector.load %arg1[%c0, %c0_0] : memref<8x32xf32, #tpu.memory_space<vmem>>, vector<8x32xf32>
    %cst = arith.constant dense<0xFF800000> : vector<8xf32>
    %1 = vector.multi_reduction <maximumf>, %0, %cst [1] : vector<8x32xf32> to vector<8xf32>
    %2 = vector.shape_cast %1 : vector<8xf32> to vector<8x1xf32>
    %3 = vector.broadcast %2 : vector<8x1xf32> to vector<8x32xf32>
    %4 = arith.subf %0, %3 : vector<8x32xf32>
    %5 = math.exp %4 : vector<8x32xf32>
    %cst_1 = arith.constant dense<0.000000e+00> : vector<8xf32>
    %6 = vector.multi_reduction <add>, %5, %cst_1 [1] : vector<8x32xf32> to vector<8xf32>
    %7 = vector.shape_cast %6 : vector<8xf32> to vector<8x1xf32>
    %8 = math.log %7 : vector<8x1xf32>
    %9 = arith.addf %2, %8 : vector<8x1xf32>
    %10 = tpu.iota {dimensions = array<i32: 1>} : vector<8x32xi32>
    %c0_2 = arith.constant 0 : index
    %c0_3 = arith.constant 0 : index
    %11 = vector.load %arg2[%c0_2, %c0_3] : memref<8x1xi32, #tpu.memory_space<vmem>>, vector<8x1xi32>
    %12 = vector.broadcast %11 : vector<8x1xi32> to vector<8x32xi32>
    %13 = arith.cmpi eq, %10, %12 : vector<8x32xi32>
    %cst_4 = arith.constant 0.000000e+00 : f32
    %14 = vector.broadcast %cst_4 : f32 to vector<8x32xf32>
    %15 = arith.select %13, %0, %14 : vector<8x32xi1>, vector<8x32xf32>
    %cst_5 = arith.constant dense<0.000000e+00> : vector<8xf32>
    %16 = vector.multi_reduction <add>, %15, %cst_5 [1] : vector<8x32xf32> to vector<8xf32>
    %17 = vector.shape_cast %16 : vector<8xf32> to vector<8x1xf32>
    %cst_6 = arith.constant dense<0.000000e+00> : vector<8xf32>
    %18 = vector.multi_reduction <add>, %0, %cst_6 [1] : vector<8x32xf32> to vector<8xf32>
    %19 = vector.shape_cast %18 : vector<8xf32> to vector<8x1xf32>
    %20 = arith.subf %17, %9 : vector<8x1xf32>
    %cst_7 = arith.constant 3.200000e+01 : f32
    %21 = vector.broadcast %cst_7 : f32 to vector<8x1xf32>
    %22 = arith.mulf %21, %9 : vector<8x1xf32>
    %23 = arith.subf %19, %22 : vector<8x1xf32>
    %cst_8 = arith.constant 0.899999976 : f32
    %24 = vector.broadcast %cst_8 : f32 to vector<8x1xf32>
    %25 = arith.mulf %24, %20 : vector<8x1xf32>
    %cst_9 = arith.constant 3.125000e-03 : f32
    %26 = vector.broadcast %cst_9 : f32 to vector<8x1xf32>
    %27 = arith.mulf %26, %23 : vector<8x1xf32>
    %28 = arith.addf %25, %27 : vector<8x1xf32>
    %29 = tpu.iota {dimensions = array<i32: 0>} : vector<8x1xi32>
    %c8_i32 = arith.constant 8 : i32
    %30 = arith.muli %arg0, %c8_i32 : i32
    %31 = vector.broadcast %30 : i32 to vector<8x1xi32>
    %32 = arith.addi %31, %29 : vector<8x1xi32>
    %c8_i32_10 = arith.constant 8 : i32
    %33 = vector.broadcast %c8_i32_10 : i32 to vector<8x1xi32>
    %34 = arith.cmpi slt, %32, %33 : vector<8x1xi32>
    %cst_11 = arith.constant 0.000000e+00 : f32
    %35 = vector.broadcast %cst_11 : f32 to vector<8x1xf32>
    %36 = arith.select %34, %28, %35 : vector<8x1xi1>, vector<8x1xf32>
    %37 = vector.shape_cast %36 : vector<8x1xf32> to vector<1x8x1xf32>
    %cst_12 = arith.constant dense<0.000000e+00> : vector<1xf32>
    %38 = vector.multi_reduction <add>, %37, %cst_12 [1, 2] : vector<1x8x1xf32> to vector<1xf32>
    %39 = vector.shape_cast %38 : vector<1xf32> to vector<1x1x1xf32>
    %40 = vector.extract %39[0, 0, 0] : f32 from vector<1x1x1xf32>
    %cst_13 = arith.constant 0.000000e+00 : f32
    %41 = arith.subf %cst_13, %40 : f32
    %c0_14 = arith.constant 0 : index
    %c0_15 = arith.constant 0 : index
    %42 = memref.load %arg3[%c0_14, %c0_15] : memref<1x1xf32, #tpu.memory_space<smem>>
    memref.store %41, %arg3[%c0_14, %c0_15] : memref<1x1xf32, #tpu.memory_space<smem>>
    return
  }
  func.func @transform_0(%arg0: i32) -> (i32, i32) {
    %c0_i32 = arith.constant 0 : i32
    %c0_i32_0 = arith.constant 0 : i32
    return %arg0, %c0_i32 : i32, i32
  }
  func.func @transform_1(%arg0: i32) -> (i32, i32) {
    %c0_i32 = arith.constant 0 : i32
    %c0_i32_0 = arith.constant 0 : i32
    return %arg0, %c0_i32 : i32, i32
  }
  func.func @transform_2(%arg0: i32) -> (i32, i32) {
    %c0_i32 = arith.constant 0 : i32
    %c0_i32_0 = arith.constant 0 : i32
    return %arg0, %c0_i32 : i32, i32
  }
}

</mosaic_0001>

<bundles_post_ra>
// kernel: tpu_custom_call.1
= control target key start
LH: loop header
LB: loop body
LE: loop exit
PB: predicated region body
PF: predicated region fallthrough
CT: control target
= control target key end

     0   :  { %vm13_vm0 = vcmask 261120   ;;  %s140_s0 = inlined_call_operand.vmem [shape: f32[8,32], index: 0, kind: input, shape index: {}]   ;;  %s141_s1 = inlined_call_operand.vmem [shape: s32[8,1], index: 1, kind: input, shape index: {}]   ;;  %s142_s2 = inlined_call_operand.hbm [shape: f32[1,1], index: 2, kind: output, shape index: {}]  }
   0x1   :  { %v12_v0 = vld [vmem:[%s140_s0] sm:$0xff] }
   0x2   :  { %7 = vsyncpa [#allocation3], 0  ;;  %v14_v1 = vsel %vm13_vm0, %v12_v0, -inf  ;;  %v101_v2 = vmov 0   ;;  %v28_v3 = vld [vmem:[%s141_s1] sm:$0xff]  ;;  %v26_v7 = vlaneseq  ;;  %v37_v14 = vsel %vm13_vm0, %v12_v0, 0.0 }
   0x3   :  { %84 = vset.pattern.permute.xlu0 %v101_v2  ;;  %vm53_vm2 = vcmask 7168   ;;  %s89_s15 = scalar_lea.hbm %s142_s2, 16 }
   0x4   :  { %15 = vmax.xlane.f32.xlu0 %v14_v1  ;;  %v27_v8 = vand.u32 127, %v26_v7  ;;  %p90_p0 = scmp.ne.s32.totalorder %s142_s2, %s89_s15  ;;  %p93_p1 = scmp.lt.u32.totalorder %s89_s15, %s142_s2 }
   0x6   :  { %p95_p2 = pnand %p93_p1, %p90_p0 }
  0x1a   :  { %30 = vperm.xlu0 %84, %v28_v3  }
  0x91   :  { %v16_v4 = vpop.xlane.xlu0 %15 }
  0x92   :  { %v17_v5 = vsub.f32 %v12_v0, %v16_v4 }
  0x94   :  { %v18_v6 = vmul.f32 1.442695, %v17_v5 }
  0x96   :  { %85 = vpow2.f32 %v18_v6 }
  0x99   :  { %v31_v9 = vpop.permute.xlu0 %30 }
  0x9a   :  { %vm32_vm1 = vcmp.eq.s32.totalorder %v27_v8, %v31_v9 }
  0x9b   :  { %v33_v11 = vsel %vm32_vm1, %v12_v0, 0.0 }
  0x9c   :  { %v34_v13 = vsel %vm13_vm0, %v33_v11, 0.0 }
  0xa0   :  { %v86_v10 = vpop.eup %85 }
  0xa1   :  { %v20_v12 = vsel %vm13_vm0, %v86_v10, 0.0 }
  0xa2   :  { %21 = vadd.xlane.f32.xlu1 %v20_v12 }
  0xa6   :  { %35 = vadd.xlane.f32.xlu1 %v34_v13 }
  0xaa   :  { %38 = vadd.xlane.f32.xlu1 %v37_v14 }
 0x12f   :  { %v22_v15 = vpop.xlane.xlu1 %21 }
 0x130   :  { %87 = vlog2.f32 %v22_v15 }
 0x133   :  { %v36_v16 = vpop.xlane.xlu1 %35 }
 0x137   :  { %v39_v20 = vpop.xlane.xlu1 %38 }
 0x13a   :  { %v88_v17 = vpop.eup %87 }
 0x13b   :  { %v24_v18 = vmul.f32 0.6931472, %v88_v17 }
 0x13d   :  { %v25_v19 = vadd.f32 %v24_v18, %v16_v4 }
 0x13f   :  { %v40_v21 = vsub.f32 %v36_v16, %v25_v19  ;;  %v41_v22 = vmul.f32 32.0, %v25_v19 }
 0x141   :  { %v42_v23 = vsub.f32 %v39_v20, %v41_v22  ;;  %v43_v24 = vmul.f32 0.9, %v40_v21 }
 0x143   :  { %v44_v25 = vmul.f32 0.003125, %v42_v23 }
 0x145   :  { %v45_v26 = vadd.f32 %v44_v25, %v43_v24 }
 0x147   :  { %v54_v27 = vsel %vm53_vm2, %v45_v26, 0.0 }
 0x148   :  { %55 = vadd.xlane.f32.xlu1 %v54_v27 }
 0x1d5   :  { %v56_v28 = vpop.xlane.xlu1 %55 }
 0x1d6   :  { %v57_v29 = vrot.slane %v56_v28, 4 }
 0x1d8   :  { %v58_v30 = vadd.f32 %v57_v29, %v56_v28 }
 0x1da   :  { %v59_v31 = vrot.slane %v58_v30, 2 }
 0x1dc   :  { %v60_v32 = vadd.f32 %v59_v31, %v58_v30 }
 0x1de   :  { %v61_v33 = vrot.slane %v60_v32, 1 }
 0x1e0   :  { %v62_v34 = vadd.f32 %v61_v33, %v60_v32 }
 0x1e2   :  { %80 = vpush %v62_v34 }
 0x213   :  { %s81_s0 = spop %80 }
 0x214   :  { %s64_s1 = ssub.f32 0.0, %s81_s0 }
 0x216   :  { %66 = sst [smem:[#allocation2]] %s64_s1 }
 0x217   :  { %98 = shalt.err (!%p95_p2)
}
 0x218   :  { %s102_s20 = smov [#allocation2]  }
 0x219   :  { %74 = dma.smem_to_hbm %s102_s20, 16, %s142_s2, [#allocation3]  }
 0x21a   :  { %99 = dma.done.wait [#allocation3], 16  }
 0x21b   :  { %100 = vsyncadd [#allocation3], 4294967280 }
 0x21c   :  { %78 = sfence }
 0x21d   :  { %79 = vsyncpa [#allocation3], 1 }

</bundles_post_ra>
